<compile_context>
chip_gen: v5e
topology: v5e:2x2
jax: 0.10.0
libtpu: 0.0.40
codegen_flags: <defaults>
</compile_context>

<pallas_src>
import functools

import jax
import jax.numpy as jnp
from jax.experimental import pallas as pl
from jax.experimental.pallas import tpu as pltpu

# Hyper-params implied by the module (STATE_DIMENSION / NUM_ACTIONS are external
# constants in the original code; pick small deterministic values here).
STATE_DIMENSION = 32
HIDDEN = 128
NUM_ACTIONS = 8


def _round_up(x, m):
    return (x + m - 1) // m * m


def policy_fwd_kernel(x_ref, w1_ref, b1_ref, w2_ref, b2_ref, out_ref):
    # affine1 on MXU: [TB, S] @ [S, 128] -> [TB, 128], f32 accumulate
    h = jnp.dot(x_ref[...], w1_ref[...], preferred_element_type=jnp.float32)
    h = h + b1_ref[...]
    # affine2 on MXU: [TB, 128] @ [128, NUM_ACTIONS] -> [TB, NUM_ACTIONS]
    s = jnp.dot(h, w2_ref[...], preferred_element_type=jnp.float32)
    s = s + b2_ref[...]
    # softmax over the action axis, exact normalization (rows sum to 1)
    m = jnp.max(s, axis=-1, keepdims=True)
    e = jnp.exp(s - m)
    denom = jnp.sum(e, axis=-1, keepdims=True)
    out_ref[...] = (e / denom).astype(out_ref.dtype)


@functools.partial(jax.jit, static_argnames=("block_b",))
def policy_forward(x, w1, b1, w2, b2, *, block_b=1024):
    """x: [B, STATE_DIMENSION] f32 -> probs: [B, NUM_ACTIONS] f32."""
    B, S = x.shape
    B8 = _round_up(B, 8)                      # sublane-aligned batch
    TB = min(block_b, B8)                     # batch tile (multiple of 8)
    # v7x megacore: keep >= 2 grid steps when the batch is big enough so both
    # TensorCores get work (harmless on single-TC v5e/v6e).
    if B8 >= 16 and TB >= B8:
        TB = _round_up(B8 // 2, 8)
    B_pad = _round_up(B, TB)
    nb = B_pad // TB

    # Only pad the batch when the tail doesn't divide TB (no K/action padding).
    x_in = x if B_pad == B else jnp.zeros((B_pad, S), x.dtype).at[:B, :].set(x)
    b1_r = b1.reshape(1, HIDDEN)
    b2_r = b2.reshape(1, NUM_ACTIONS)

    cost = pl.CostEstimate(
        flops=2 * B_pad * (S * HIDDEN + HIDDEN * NUM_ACTIONS),
        transcendentals=B_pad * NUM_ACTIONS,
        bytes_accessed=(x_in.size * 4 + w1.size * 4 + b1_r.size * 4
                        + w2.size * 4 + b2_r.size * 4
                        + B_pad * NUM_ACTIONS * 4),
    )

    out = pl.pallas_call(
        policy_fwd_kernel,
        out_shape=jax.ShapeDtypeStruct((B_pad, NUM_ACTIONS), jnp.float32),
        grid_spec=pltpu.PrefetchScalarGridSpec(
            num_scalar_prefetch=0,
            grid=(nb,),
            in_specs=[
                pl.BlockSpec((TB, S), lambda i: (i, 0)),              # x tile
                pl.BlockSpec((S, HIDDEN), lambda i: (0, 0)),          # w1 (VMEM-resident)
                pl.BlockSpec((1, HIDDEN), lambda i: (0, 0)),          # b1 (resident)
                pl.BlockSpec((HIDDEN, NUM_ACTIONS), lambda i: (0, 0)),# w2 (resident)
                pl.BlockSpec((1, NUM_ACTIONS), lambda i: (0, 0)),     # b2 (resident)
            ],
            out_specs=pl.BlockSpec((TB, NUM_ACTIONS), lambda i: (i, 0)),
        ),
        compiler_params=pltpu.CompilerParams(
            dimension_semantics=("parallel",)),   # megacore split on v7x
        cost_estimate=cost,
    )(x_in, w1, b1_r, w2, b2_r)

    return out[:B, :]


def _reference(x, w1, b1, w2, b2):
    h = jnp.dot(x, w1) + b1.reshape(1, -1)
    s = jnp.dot(h, w2) + b2.reshape(1, -1)
    return jax.nn.softmax(s, axis=1)


# TODO(synk): get_action / finish_episode / save_to / load_from / start_train
# are host-side sampling, RL bookkeeping and file IO with no Pallas equivalent.

if __name__ == "__main__":
    key = jax.random.PRNGKey(0)
    kx, k1, k2, k3, k4, kx2 = jax.random.split(key, 6)

    # Deterministic parameter init (shapes match nn.Linear, stored transposed).
    w1 = jax.random.normal(k1, (STATE_DIMENSION, HIDDEN), dtype=jnp.float32) * 0.1
    b1 = jax.random.normal(k2, (1, HIDDEN), dtype=jnp.float32) * 0.01
    w2 = jax.random.normal(k3, (HIDDEN, NUM_ACTIONS), dtype=jnp.float32) * 0.1
    b2 = jax.random.normal(k4, (1, NUM_ACTIONS), dtype=jnp.float32) * 0.01

    # Small-batch check (typical single-step policy eval).
    B = 8
    x = jax.random.normal(kx, (B, STATE_DIMENSION), dtype=jnp.float32)
    probs = policy_forward(x, w1, b1, w2, b2)
    jax.block_until_ready(probs)
    ref = _reference(x, w1, b1, w2, b2)
    assert probs.shape == (B, NUM_ACTIONS)
    assert jnp.allclose(probs, ref, atol=2e-3, rtol=2e-3)
    assert jnp.allclose(jnp.sum(probs, axis=1), 1.0, atol=1e-3)

    # Larger rollout batch exercising the multi-tile (>=2 step) batch grid.
    B2 = 512
    x2 = jax.random.normal(kx2, (B2, STATE_DIMENSION), dtype=jnp.float32)
    probs2 = policy_forward(x2, w1, b1, w2, b2)
    jax.block_until_ready(probs2)
    ref2 = _reference(x2, w1, b1, w2, b2)
    assert probs2.shape == (B2, NUM_ACTIONS)
    assert jnp.allclose(probs2, ref2, atol=2e-3, rtol=2e-3)
    assert jnp.allclose(jnp.sum(probs2, axis=1), 1.0, atol=1e-3)

    print("KERNEL_OK")
</pallas_src>

<mosaic_0001>
module attributes {stable_mosaic.version = 11 : i64} {
  func.func @policy_fwd_kernel(%arg0: i32, %arg1: memref<8x32xf32, #tpu.memory_space<vmem>>, %arg2: memref<32x128xf32, #tpu.memory_space<vmem>>, %arg3: memref<1x128xf32, #tpu.memory_space<vmem>>, %arg4: memref<128x8xf32, #tpu.memory_space<vmem>>, %arg5: memref<1x8xf32, #tpu.memory_space<vmem>>, %arg6: memref<8x8xf32, #tpu.memory_space<vmem>>) attributes {dimension_semantics = [#tpu.dimension_semantics<parallel>], iteration_bounds = array<i64: 1>, scalar_prefetch = 0 : i64, scratch_operands = 0 : i64, tpu.core_type = #tpu.core_type<tc>, window_params = [{transform_indices = @transform_0, window_bounds = array<i64: 8, 32>}, {pipeline_mode = #tpu.pipeline_mode<synchronous>, transform_indices = @transform_1, window_bounds = array<i64: 32, 128>}, {pipeline_mode = #tpu.pipeline_mode<synchronous>, transform_indices = @transform_2, window_bounds = array<i64: 1, 128>}, {pipeline_mode = #tpu.pipeline_mode<synchronous>, transform_indices = @transform_3, window_bounds = array<i64: 128, 8>}, {pipeline_mode = #tpu.pipeline_mode<synchronous>, transform_indices = @transform_4, window_bounds = array<i64: 1, 8>}, {transform_indices = @transform_5, window_bounds = array<i64: 8, 8>}]} {
    %c0 = arith.constant 0 : index
    %c0_0 = arith.constant 0 : index
    %0 = vector.load %arg1[%c0, %c0_0] : memref<8x32xf32, #tpu.memory_space<vmem>>, vector<8x32xf32>
    %c0_1 = arith.constant 0 : index
    %c0_2 = arith.constant 0 : index
    %1 = vector.load %arg2[%c0_1, %c0_2] : memref<32x128xf32, #tpu.memory_space<vmem>>, vector<32x128xf32>
    %cst = arith.constant dense<0.000000e+00> : vector<8x128xf32>
    %2 = tpu.matmul %0, %1, %cst {dimension_numbers = #tpu.dot_dimension_numbers<[1], [0], [0], [1], [0, 0, 1, 1], [], []>} : vector<8x32xf32>, vector<32x128xf32>, vector<8x128xf32> -> vector<8x128xf32>
    %c0_3 = arith.constant 0 : index
    %c0_4 = arith.constant 0 : index
    %3 = vector.load %arg3[%c0_3, %c0_4] : memref<1x128xf32, #tpu.memory_space<vmem>>, vector<1x128xf32>
    %4 = vector.broadcast %3 : vector<1x128xf32> to vector<8x128xf32>
    %5 = arith.addf %2, %4 : vector<8x128xf32>
    %c0_5 = arith.constant 0 : index
    %c0_6 = arith.constant 0 : index
    %6 = vector.load %arg4[%c0_5, %c0_6] : memref<128x8xf32, #tpu.memory_space<vmem>>, vector<128x8xf32>
    %cst_7 = arith.constant dense<0.000000e+00> : vector<8x8xf32>
    %7 = tpu.matmul %5, %6, %cst_7 {dimension_numbers = #tpu.dot_dimension_numbers<[1], [0], [0], [1], [0, 0, 1, 1], [], []>} : vector<8x128xf32>, vector<128x8xf32>, vector<8x8xf32> -> vector<8x8xf32>
    %c0_8 = arith.constant 0 : index
    %c0_9 = arith.constant 0 : index
    %8 = vector.load %arg5[%c0_8, %c0_9] : memref<1x8xf32, #tpu.memory_space<vmem>>, vector<1x8xf32>
    %9 = vector.broadcast %8 : vector<1x8xf32> to vector<8x8xf32>
    %10 = arith.addf %7, %9 : vector<8x8xf32>
    %cst_10 = arith.constant dense<0xFF800000> : vector<8xf32>
    %11 = vector.multi_reduction <maximumf>, %10, %cst_10 [1] : vector<8x8xf32> to vector<8xf32>
    %12 = vector.shape_cast %11 : vector<8xf32> to vector<8x1xf32>
    %13 = vector.broadcast %12 : vector<8x1xf32> to vector<8x8xf32>
    %14 = arith.subf %10, %13 : vector<8x8xf32>
    %15 = math.exp %14 : vector<8x8xf32>
    %cst_11 = arith.constant dense<0.000000e+00> : vector<8xf32>
    %16 = vector.multi_reduction <add>, %15, %cst_11 [1] : vector<8x8xf32> to vector<8xf32>
    %17 = vector.shape_cast %16 : vector<8xf32> to vector<8x1xf32>
    %18 = vector.broadcast %17 : vector<8x1xf32> to vector<8x8xf32>
    %19 = arith.divf %15, %18 : vector<8x8xf32>
    %c0_12 = arith.constant 0 : index
    %c0_13 = arith.constant 0 : index
    %20 = vector.load %arg6[%c0_12, %c0_13] : memref<8x8xf32, #tpu.memory_space<vmem>>, vector<8x8xf32>
    tpu.vector_store %arg6[%c0_12, %c0_13], %19 {strides = array<i32>} : memref<8x8xf32, #tpu.memory_space<vmem>>, vector<8x8xf32>,
    return
  }
  func.func @transform_0(%arg0: i32) -> (i32, i32) {
    %c0_i32 = arith.constant 0 : i32
    %c0_i32_0 = arith.constant 0 : i32
    return %arg0, %c0_i32 : i32, i32
  }
  func.func @transform_1(%arg0: i32) -> (i32, i32) {
    %c0_i32 = arith.constant 0 : i32
    %c0_i32_0 = arith.constant 0 : i32
    %c0_i32_1 = arith.constant 0 : i32
    return %c0_i32, %c0_i32_0 : i32, i32
  }
  func.func @transform_2(%arg0: i32) -> (i32, i32) {
    %c0_i32 = arith.constant 0 : i32
    %c0_i32_0 = arith.constant 0 : i32
    %c0_i32_1 = arith.constant 0 : i32
    return %c0_i32, %c0_i32_0 : i32, i32
  }
  func.func @transform_3(%arg0: i32) -> (i32, i32) {
    %c0_i32 = arith.constant 0 : i32
    %c0_i32_0 = arith.constant 0 : i32
    %c0_i32_1 = arith.constant 0 : i32
    return %c0_i32, %c0_i32_0 : i32, i32
  }
  func.func @transform_4(%arg0: i32) -> (i32, i32) {
    %c0_i32 = arith.constant 0 : i32
    %c0_i32_0 = arith.constant 0 : i32
    %c0_i32_1 = arith.constant 0 : i32
    return %c0_i32, %c0_i32_0 : i32, i32
  }
  func.func @transform_5(%arg0: i32) -> (i32, i32) {
    %c0_i32 = arith.constant 0 : i32
    %c0_i32_0 = arith.constant 0 : i32
    return %arg0, %c0_i32 : i32, i32
  }
}

</mosaic_0001>

<bundles_post_ra>
// kernel: policy_forward.1
= control target key start
LH: loop header
LB: loop body
LE: loop exit
PB: predicated region body
PF: predicated region fallthrough
CT: control target
= control target key end

     0   :  { %vm30_vm0 = vcmask 261120   ;;  %s276_s0 = inlined_call_operand.vmem [shape: f32[8,32], index: 0, kind: input, shape index: {}]   ;;  %s277_s1 = inlined_call_operand.vmem [shape: f32[32,128], index: 1, kind: input, shape index: {}]   ;;  %s278_s2 = inlined_call_operand.vmem [shape: f32[1,128], index: 2, kind: input, shape index: {}]   ;;  %s279_s3 = inlined_call_operand.vmem [shape: f32[128,8], index: 3, kind: input, shape index: {}]   ;;  %s280_s4 = inlined_call_operand.vmem [shape: f32[1,8], index: 4, kind: input, shape index: {}]   ;;  %s281_s5 = inlined_call_operand.hbm [shape: f32[8,8], index: 5, kind: output, shape index: {}]  }
   0x1   :  { %v25_v0 = vld [vmem:[%s277_s1 + $0x18] sm:$0xff]  ;;  %v24_v1 = vld [vmem:[%s277_s1 + $0x10] sm:$0xff]  ;;  %v23_v3 = vld [vmem:[%s277_s1 + $0x8] sm:$0xff] }
   0x2   :  { %46 = vmatpush.msra.mxu0 %v25_v0  ;;  %v69_v2 = vld [vmem:[%s279_s3 + $0x78] sm:$0xff]  ;;  %v68_v4 = vld [vmem:[%s279_s3 + $0x70] sm:$0xff]  ;;  %v67_v5 = vld [vmem:[%s279_s3 + $0x68] sm:$0xff] }
   0x3   :  { %74 = vmatpush.msra.mxu1 %v69_v2  ;;  %v22_v6 = vld [vmem:[%s277_s1] sm:$0xff]  ;;  %v65_v9 = vld [vmem:[%s279_s3 + $0x58] sm:$0xff] }
   0x4   :  { %47 = vmatpush.msra.mxu0 %v24_v1  ;;  %v21_v7 = vld [vmem:[%s276_s0] sm:$0xff] }
   0x5   :  { %75 = vmatpush.msra.mxu1 %v68_v4  ;;  %v66_v8 = vld [vmem:[%s279_s3 + $0x60] sm:$0xff] }
   0x6   :  { %48 = vmatpush.msra.mxu0 %v23_v3 }
   0x7   :  { %76 = vmatpush.msra.mxu1 %v67_v5 }
   0x8   :  { %49 = vmatpush.msra.mxu0 %v22_v6 }
   0x9   :  { %10 = vsyncpa [#allocation3], 0  ;;  %136 = vmatmul.msk.f32.vlgmr.msra.gmra.mxu0 %vm30_vm0, %v21_v7  ;;  %77 = vmatpush.msra.mxu1 %v66_v8  ;;  %v64_v10 = vld [vmem:[%s279_s3 + $0x50] sm:$0xff]  ;;  %v63_v11 = vld [vmem:[%s279_s3 + $0x48] sm:$0xff]  ;;  %vm94_vm1 = vcmask 64512   ;;  %s127_s1 = sshll.u32 %s281_s5, 4  ;;  %s128_s1 = int_to_ptr.hbm [resolvable:$true] %s127_s1 }
   0xa   :  { %v62_v12 = vld [vmem:[%s279_s3 + $0x40] sm:$0xff]  ;;  %v61_v13 = vld [vmem:[%s279_s3 + $0x38] sm:$0xff]  ;;  %v60_v14 = vld [vmem:[%s279_s3 + $0x30] sm:$0xff] }
   0xb   :  { %78 = vmatpush.msra.mxu1 %v65_v9  ;;  %v59_v15 = vld [vmem:[%s279_s3 + $0x28] sm:$0xff]  ;;  %v58_v16 = vld [vmem:[%s279_s3 + $0x20] sm:$0xff]  ;;  %v57_v17 = vld [vmem:[%s279_s3 + $0x18] sm:$0xff] }
   0xc   :  { %v56_v18 = vld [vmem:[%s279_s3 + $0x10] sm:$0xff]  ;;  %v55_v19 = vld [vmem:[%s279_s3 + $0x8] sm:$0xff]  ;;  %v54_v20 = vld [vmem:[%s279_s3] sm:$0xff] }
   0xd   :  { %79 = vmatpush.msra.mxu1 %v64_v10  ;;  %v138_v21 = vld [vmem:[%s278_s2] ss:$0 sm:$0xff]  ;;  %s170_s2 = smov [#allocation2]  }
   0xe   :  { %v139_v24 = vld [vmem:[%s280_s4] ss:$0 sm:$0xff]  ;;  %s125_s3 = sshll.u32 %s170_s2, 4  ;;  %s126_s3 = int_to_ptr.vmem [resolvable:$true] %s125_s3 }
   0xf   :  { %80 = vmatpush.msra.mxu1 %v63_v11 }
  0x11   :  { %81 = vmatpush.msra.mxu1 %v62_v12 }
  0x13   :  { %82 = vmatpush.msra.mxu1 %v61_v13 }
  0x15   :  { %83 = vmatpush.msra.mxu1 %v60_v14 }
  0x17   :  { %84 = vmatpush.msra.mxu1 %v59_v15 }
  0x19   :  { %85 = vmatpush.msra.mxu1 %v58_v16 }
  0x1b   :  { %86 = vmatpush.msra.mxu1 %v57_v17 }
  0x1d   :  { %87 = vmatpush.msra.mxu1 %v56_v18 }
  0x1f   :  { %88 = vmatpush.msra.mxu1 %v55_v19 }
  0x21   :  { %89 = vmatpush.msra.mxu1 %v54_v20 }
  0x86   :  { %v51_v22 = vpop.f32.mrf.mxu0 }
  0x87   :  { %v52_v23 = vadd.f32 %v138_v21, %v51_v22 }
  0x89   :  { %90 = vmatmul.f32.vlgmr.msra.gmra.mxu1 %v52_v23 }
 0x106   :  { %v91_v25 = vpop.f32.mrf.mxu1 }
 0x107   :  { %v92_v26 = vadd.f32 %v139_v24, %v91_v25 }
 0x109   :  { %v95_v27 = vsel %vm94_vm1, %v92_v26, -inf }
 0x10a   :  { %96 = vmax.xlane.f32.xlu0 %v95_v27 }
 0x17d   :  { %v97_v28 = vpop.xlane.xlu0 %96 }
 0x17e   :  { %v98_v29 = vsub.f32 %v92_v26, %v97_v28 }
 0x180   :  { %v99_v30 = vmul.f32 1.442695, %v98_v29 }
 0x182   :  { %140 = vpow2.f32 %v99_v30 }
 0x188   :  { %v141_v31 = vpop.eup %140 }
 0x189   :  { %v101_v32 = vsel %vm94_vm1, %v141_v31, 0.0 }
 0x18a   :  { %102 = vadd.xlane.f32.xlu0 %v101_v32 }
 0x1fd   :  { %v103_v33 = vpop.xlane.xlu0 %102 }
 0x1fe   :  { %142 = vrcp.f32 %v103_v33  ;;  %v115_v37 = vand.u32 2147483648, %v103_v33  ;;  %v113_v39 = vand.u32 2147483647, %v103_v33  ;;  %vm109_vm3 = vweird.f32 %v103_v33 }
 0x200   :  { %v116_v41 = vor.u32 1.1754944e-38, %v115_v37  ;;  %vm114_vm5 = vcmp.eq.f32.partialorder %v113_v39, 8.507059e+37 }
 0x204   :  { %v143_v34 = vpop.eup %142 }
 0x205   :  { %v105_v35 = vmul.f32 %v143_v34, %v103_v33  ;;  %vm110_vm2 = vweird.f32 %v143_v34 }
 0x206   :  { %vm111_vm4 = vmor %vm109_vm3, %vm110_vm2 }
 0x207   :  { %v106_v36 = vsub.f32 1.0, %v105_v35 }
 0x209   :  { %v107_v38 = vmul.f32 %v143_v34, %v106_v36 }
 0x20b   :  { %v108_v40 = vadd.f32 %v143_v34, %v107_v38 }
 0x20d   :  { %v112_v42 = vsel %vm111_vm4, %v143_v34, %v108_v40 }
 0x20e   :  { %v117_v43 = vsel %vm114_vm5, %v116_v41, %v112_v42 }
 0x20f   :  { %v118_v44 = vmul.f32 %v141_v31, %v117_v43 }
 0x211   :  { %119 = vst.msk [vmem:[#allocation2] sm:$0xff] %vm94_vm1, %v118_v44 }
 0x212   :  { %130 = dma.vmem_to_hbm [thread:$0]  %s126_s3, 128, %s128_s1, [#allocation3]  }
 0x213   :  { %168 = dma.done.wait [#allocation3], 128  }
 0x214   :  { %169 = vsyncadd [#allocation3], 4294967168 }
 0x215   :  { %135 = vsyncpa [#allocation3], 1 }

</bundles_post_ra>
